<compile_context>
chip_gen: v7x
topology: tpu7x:2x2x1
jax: 0.10.0
libtpu: 0.0.40
codegen_flags: <defaults>
</compile_context>

<pallas_src>
import functools

import jax
import jax.numpy as jnp
from jax.experimental import pallas as pl
from jax.experimental.pallas import tpu as pltpu


# -log(1e-8): the reference clamps diag(softmax(P)) at 1e-8 before log().
_NEG_LOG_CLAMP = 18.420680743952367


def _softmax(x, axis):
    # Numerically stable softmax; the denominator reciprocal goes to the EUP
    # slot.  (The approximate reciprocal only touches intermediate A1/B here —
    # the value fed into log() uses the exact log-sum-exp path below.)
    m = jnp.max(x, axis=axis, keepdims=True)
    e = jnp.exp(x - m)
    s = jnp.sum(e, axis=axis, keepdims=True)
    return e * pl.reciprocal(s, approx=True)


def _sfs_loss_kernel(slot_ref, featT_ref, out_ref, *,
                     inv_nabla_1, inv_nabla_2, mxu_dtype):
    slot = slot_ref[...]      # (Bblk, K, C)
    featT = featT_ref[...]    # (Bblk, C, N)  -- feature pre-transposed in wrapper

    # bf16 operands for the MXU (f32 accumulation) — biggest win on v5e.
    if mxu_dtype is not None:
        slot = slot.astype(mxu_dtype)
        featT = featT.astype(mxu_dtype)

    # s1[b] = slot[b] @ feature[b].T / nabla_1 : canonical (K,C)@(C,N) contraction.
    s1 = jnp.einsum('bkc,bcn->bkn', slot, featT,
                    preferred_element_type=jnp.float32)       # (Bblk, K, N) f32
    s1 = s1 * inv_nabla_1

    # A1 = row softmax over N.  A2 = softmax(s1^T over K) = B^T, never formed.
    A1 = _softmax(s1, axis=-1)                                 # (Bblk, K, N)
    B = _softmax(s1, axis=1)                                   # (Bblk, K, N) == A2^T

    # diag(P)[b,i] = sum_n A1[b,i,n] * B[b,i,n]   (f32, no iota/where mask)
    diag = jnp.sum(A1 * B, axis=-1, keepdims=True)             # (Bblk, K, 1)

    if mxu_dtype is not None:
        A1m = A1.astype(mxu_dtype)
        Bm = B.astype(mxu_dtype)
    else:
        A1m, Bm = A1, B

    # P[b] = A1[b] @ A2[b] = A1[b] @ B[b]^T
    P = jnp.einsum('bin,bjn->bij', A1m, Bm,
                   preferred_element_type=jnp.float32)         # (Bblk, K, K) f32

    if inv_nabla_2 != 1.0:                                     # static check
        Z = P * inv_nabla_2
        zdiag = diag * inv_nabla_2
    else:
        Z = P
        zdiag = diag

    # -log(clamp(softmax(Z)_ii, 1e-8)) == min(logsumexp_j(Z_ij) - Z_ii, -log(1e-8))
    m = jnp.max(Z, axis=-1, keepdims=True)                     # (Bblk, K, 1)
    lse = m + jnp.log(jnp.sum(jnp.exp(Z - m), axis=-1, keepdims=True))
    per_slot = jnp.minimum(lse - zdiag, _NEG_LOG_CLAMP)        # (Bblk, K, 1)

    k = per_slot.shape[1]
    loss = jnp.sum(per_slot, axis=1) * (1.0 / k)               # (Bblk, 1)

    # Lane-dense store: broadcast each sample's loss across the 128-lane row.
    out_ref[...] = jnp.broadcast_to(loss, out_ref.shape).astype(out_ref.dtype)


def slot_feature_slot_loss_batched(slot, feature, nabla_1=0.1, nabla_2=1.0, *,
                                   block_b=8, mxu_dtype=jnp.bfloat16):
    """slot: (B, K, C), feature: (B, N, C) -> (B,) f32 losses."""
    Bsz, K, C = slot.shape
    Bf, N, Cf = feature.shape
    assert Bsz == Bf and C == Cf, "slot/feature batch or channel dims mismatch"

    # Batch-block size: amortize per-step overhead, but keep grid length >= 2
    # whenever possible so both v7x TensorCores get work.
    bblk = max(1, min(int(block_b), Bsz))
    if Bsz >= 2:
        bblk = min(bblk, max(1, Bsz // 2))
    nsteps = int(pl.cdiv(Bsz, bblk))
    Bpad = nsteps * bblk
    if Bpad != Bsz:
        pad = Bpad - Bsz
        slot = jnp.pad(slot, ((0, pad), (0, 0), (0, 0)))        # zero pads are NaN-safe
        feature = jnp.pad(feature, ((0, pad), (0, 0), (0, 0)))

    # Layout plumbing (wrapper side, not compute): lane-dense (C, N) RHS so the
    # in-kernel score matmul is a canonical sublane contraction (no vxpose).
    feat_t = jnp.swapaxes(feature, 1, 2)                        # (Bpad, C, N)

    # Skip redundant casts if the inputs already arrive in the MXU dtype.
    mxu = None if (mxu_dtype is not None and slot.dtype == mxu_dtype) else mxu_dtype

    kernel = functools.partial(
        _sfs_loss_kernel,
        inv_nabla_1=1.0 / float(nabla_1),
        inv_nabla_2=1.0 / float(nabla_2),
        mxu_dtype=mxu,
    )

    itemsize = jnp.dtype(slot.dtype).itemsize
    cost = pl.CostEstimate(
        flops=2 * Bpad * (K * N * C + K * K * N) + 10 * Bpad * K * N,
        transcendentals=Bpad * (2 * K * N + K * K + 4 * K),
        bytes_accessed=Bpad * (K * C + N * C) * itemsize + nsteps * bblk * 128 * 4,
    )

    # Rough per-step VMEM (double-buffered I/O + f32 intermediates); only raise
    # the scoped-VMEM limit if a very large block_b would exceed the default.
    vmem_est = (2 * (bblk * K * C + bblk * C * N) * itemsize
                + 2 * bblk * 128 * 4 + 8 * bblk * K * N * 4)
    cp_kwargs = dict(dimension_semantics=("parallel",))
    if vmem_est > 12 * 1024 * 1024:
        cp_kwargs["vmem_limit_bytes"] = int(min(2 * vmem_est, 64 * 1024 * 1024))

    out = pl.pallas_call(
        kernel,
        out_shape=jax.ShapeDtypeStruct((nsteps, bblk, 128), jnp.float32),
        grid=(nsteps,),
        in_specs=[
            pl.BlockSpec((bblk, K, C), lambda b: (b, 0, 0)),
            pl.BlockSpec((bblk, C, N), lambda b: (b, 0, 0)),
        ],
        out_specs=pl.BlockSpec((None, bblk, 128), lambda b: (b, 0, 0)),
        compiler_params=pltpu.CompilerParams(**cp_kwargs),
        cost_estimate=cost,
    )(slot, feat_t)

    return out[:, :, 0].reshape(-1)[:Bsz]


def slot_feature_slot_loss(slot, feature, nabla_1=0.1, nabla_2=1.0, **kwargs):
    """slot: (K, C), feature: (N, C) -> scalar f32 loss (routed via batched path)."""
    return slot_feature_slot_loss_batched(slot[None], feature[None],
                                          nabla_1, nabla_2, **kwargs)[0]


if __name__ == "__main__":
    # Module-consistent small shapes: K slots, N spatial features, C channels.
    K, N, C = 8, 128, 32
    key = jax.random.PRNGKey(0)
    k1, k2, k3, k4 = jax.random.split(key, 4)

    # Moderate-magnitude inputs (std 0.3): with nabla_1=0.1 the softmaxes are
    # informative but not fully saturated, which exercises the numerics.
    slot = 0.3 * jax.random.normal(k1, (K, C), dtype=jnp.float32)
    feature = 0.3 * jax.random.normal(k2, (N, C), dtype=jnp.float32)

    def ref_loss(s, f, n1=0.1, n2=1.0):
        A1 = jax.nn.softmax((s @ f.T) / n1, axis=1)
        A2 = jax.nn.softmax((f @ s.T) / n1, axis=1)
        P = jax.nn.softmax((A1 @ A2) / n2, axis=1)
        return -jnp.mean(jnp.log(jnp.maximum(jnp.diagonal(P), 1e-8)))

    # Tolerance reflects bf16 MXU operands (f32 accumulation) and the EUP
    # approximate reciprocals in the A1/B softmax denominators.
    TOL = dict(rtol=2e-2, atol=2e-2)

    # Single-sample path (routed through the batched kernel).
    loss = slot_feature_slot_loss(slot, feature, nabla_1=0.1, nabla_2=1.0)
    jax.block_until_ready(loss)
    ref = ref_loss(slot, feature, 0.1, 1.0)
    assert jnp.allclose(loss, ref, **TOL), (loss, ref)

    # Batched path: B=5 -> Bblk=2, grid of 3 steps, one zero-padded sample
    # (exercises batch blocking, multi-step grid, and the padding path).
    Bsz = 5
    slot_b = 0.3 * jax.random.normal(k3, (Bsz, K, C), dtype=jnp.float32)
    feat_b = 0.3 * jax.random.normal(k4, (Bsz, N, C), dtype=jnp.float32)
    loss_b = slot_feature_slot_loss_batched(slot_b, feat_b, nabla_1=0.1, nabla_2=1.0)
    jax.block_until_ready(loss_b)
    ref_b = jnp.stack([ref_loss(slot_b[i], feat_b[i], 0.1, 1.0) for i in range(Bsz)])
    assert jnp.allclose(loss_b, ref_b, **TOL), (loss_b, ref_b)

    print("KERNEL_OK")
</pallas_src>

<mosaic_0001>
module attributes {stable_mosaic.version = 11 : i64} {
  func.func @_sfs_loss_kernel(%arg0: i32, %arg1: memref<1x8x32xf32, #tpu.memory_space<vmem>>, %arg2: memref<1x32x128xf32, #tpu.memory_space<vmem>>, %arg3: memref<1x1x128xf32, #tpu.memory_space<vmem>>) attributes {dimension_semantics = [#tpu.dimension_semantics<parallel>], iteration_bounds = array<i64: 1>, scalar_prefetch = 0 : i64, scratch_operands = 0 : i64, tpu.core_type = #tpu.core_type<tc>, window_params = [{transform_indices = @transform_0, window_bounds = array<i64: 1, 8, 32>}, {transform_indices = @transform_1, window_bounds = array<i64: 1, 32, 128>}, {transform_indices = @transform_2, window_bounds = array<i64: 1, 1, 128>}]} {
    %c0 = arith.constant 0 : index
    %c0_0 = arith.constant 0 : index
    %c0_1 = arith.constant 0 : index
    %0 = vector.load %arg1[%c0, %c0_0, %c0_1] : memref<1x8x32xf32, #tpu.memory_space<vmem>>, vector<1x8x32xf32>
    %c0_2 = arith.constant 0 : index
    %c0_3 = arith.constant 0 : index
    %c0_4 = arith.constant 0 : index
    %1 = vector.load %arg2[%c0_2, %c0_3, %c0_4] : memref<1x32x128xf32, #tpu.memory_space<vmem>>, vector<1x32x128xf32>
    %2 = arith.truncf %0 : vector<1x8x32xf32> to vector<1x8x32xbf16>
    %3 = arith.truncf %1 : vector<1x32x128xf32> to vector<1x32x128xbf16>
    "tpu.trace_start"() <{level = 10 : i32, message = "bkc,bcn->bkn"}> : () -> ()
    %cst = arith.constant dense<0.000000e+00> : vector<1x8x128xf32>
    %4 = tpu.matmul %2, %3, %cst {dimension_numbers = #tpu.dot_dimension_numbers<[2], [1], [1], [2], [0, 0, 0, 1, 1, 2], [0], [0]>} : vector<1x8x32xbf16>, vector<1x32x128xbf16>, vector<1x8x128xf32> -> vector<1x8x128xf32>
    "tpu.trace_stop"() : () -> ()
    %cst_5 = arith.constant 1.000000e+01 : f32
    %5 = vector.broadcast %cst_5 : f32 to vector<1x8x128xf32>
    %6 = arith.mulf %4, %5 : vector<1x8x128xf32>
    %cst_6 = arith.constant dense<0xFF800000> : vector<1x8xf32>
    %7 = vector.multi_reduction <maximumf>, %6, %cst_6 [2] : vector<1x8x128xf32> to vector<1x8xf32>
    %8 = vector.shape_cast %7 : vector<1x8xf32> to vector<1x8x1xf32>
    %9 = vector.broadcast %8 : vector<1x8x1xf32> to vector<1x8x128xf32>
    %10 = arith.subf %6, %9 : vector<1x8x128xf32>
    %11 = math.exp %10 : vector<1x8x128xf32>
    %cst_7 = arith.constant dense<0.000000e+00> : vector<1x8xf32>
    %12 = vector.multi_reduction <add>, %11, %cst_7 [2] : vector<1x8x128xf32> to vector<1x8xf32>
    %13 = vector.shape_cast %12 : vector<1x8xf32> to vector<1x8x1xf32>
    %14 = tpu.reciprocal %13 {approx = true} : vector<1x8x1xf32> -> vector<1x8x1xf32>
    %15 = vector.broadcast %14 : vector<1x8x1xf32> to vector<1x8x128xf32>
    %16 = arith.mulf %11, %15 : vector<1x8x128xf32>
    %cst_8 = arith.constant dense<0xFF800000> : vector<1x128xf32>
    %17 = vector.multi_reduction <maximumf>, %6, %cst_8 [1] : vector<1x8x128xf32> to vector<1x128xf32>
    %18 = vector.shape_cast %17 : vector<1x128xf32> to vector<1x1x128xf32>
    %19 = vector.broadcast %18 : vector<1x1x128xf32> to vector<1x8x128xf32>
    %20 = arith.subf %6, %19 : vector<1x8x128xf32>
    %21 = math.exp %20 : vector<1x8x128xf32>
    %cst_9 = arith.constant dense<0.000000e+00> : vector<1x128xf32>
    %22 = vector.multi_reduction <add>, %21, %cst_9 [1] : vector<1x8x128xf32> to vector<1x128xf32>
    %23 = vector.shape_cast %22 : vector<1x128xf32> to vector<1x1x128xf32>
    %24 = tpu.reciprocal %23 {approx = true} : vector<1x1x128xf32> -> vector<1x1x128xf32>
    %25 = vector.broadcast %24 : vector<1x1x128xf32> to vector<1x8x128xf32>
    %26 = arith.mulf %21, %25 : vector<1x8x128xf32>
    %27 = arith.mulf %16, %26 : vector<1x8x128xf32>
    %cst_10 = arith.constant dense<0.000000e+00> : vector<1x8xf32>
    %28 = vector.multi_reduction <add>, %27, %cst_10 [2] : vector<1x8x128xf32> to vector<1x8xf32>
    %29 = vector.shape_cast %28 : vector<1x8xf32> to vector<1x8x1xf32>
    %30 = arith.truncf %16 : vector<1x8x128xf32> to vector<1x8x128xbf16>
    %31 = arith.truncf %26 : vector<1x8x128xf32> to vector<1x8x128xbf16>
    "tpu.trace_start"() <{level = 10 : i32, message = "bin,bjn->bij"}> : () -> ()
    %cst_11 = arith.constant dense<0.000000e+00> : vector<1x8x8xf32>
    %32 = tpu.matmul %30, %31, %cst_11 {dimension_numbers = #tpu.dot_dimension_numbers<[2], [2], [1], [1], [0, 0, 0, 1, 1, 1], [0], [0]>} : vector<1x8x128xbf16>, vector<1x8x128xbf16>, vector<1x8x8xf32> -> vector<1x8x8xf32>
    "tpu.trace_stop"() : () -> ()
    %cst_12 = arith.constant dense<0xFF800000> : vector<1x8xf32>
    %33 = vector.multi_reduction <maximumf>, %32, %cst_12 [2] : vector<1x8x8xf32> to vector<1x8xf32>
    %34 = vector.shape_cast %33 : vector<1x8xf32> to vector<1x8x1xf32>
    %35 = vector.broadcast %34 : vector<1x8x1xf32> to vector<1x8x8xf32>
    %36 = arith.subf %32, %35 : vector<1x8x8xf32>
    %37 = math.exp %36 : vector<1x8x8xf32>
    %cst_13 = arith.constant dense<0.000000e+00> : vector<1x8xf32>
    %38 = vector.multi_reduction <add>, %37, %cst_13 [2] : vector<1x8x8xf32> to vector<1x8xf32>
    %39 = vector.shape_cast %38 : vector<1x8xf32> to vector<1x8x1xf32>
    %40 = math.log %39 : vector<1x8x1xf32>
    %41 = arith.addf %34, %40 : vector<1x8x1xf32>
    %42 = arith.subf %41, %29 : vector<1x8x1xf32>
    %cst_14 = arith.constant 18.420681 : f32
    %43 = vector.broadcast %cst_14 : f32 to vector<1x8x1xf32>
    %44 = arith.minimumf %42, %43 : vector<1x8x1xf32>
    %cst_15 = arith.constant dense<0.000000e+00> : vector<1x1xf32>
    %45 = vector.multi_reduction <add>, %44, %cst_15 [1] : vector<1x8x1xf32> to vector<1x1xf32>
    %cst_16 = arith.constant 1.250000e-01 : f32
    %46 = vector.broadcast %cst_16 : f32 to vector<1x1xf32>
    %47 = arith.mulf %45, %46 : vector<1x1xf32>
    %48 = vector.shape_cast %47 : vector<1x1xf32> to vector<1x1xf32>
    %49 = vector.broadcast %48 : vector<1x1xf32> to vector<1x128xf32>
    %c0_17 = arith.constant 0 : index
    %c0_18 = arith.constant 0 : index
    %c0_19 = arith.constant 0 : index
    %50 = vector.load %arg3[%c0_17, %c0_18, %c0_19] : memref<1x1x128xf32, #tpu.memory_space<vmem>>, vector<1x1x128xf32>
    %51 = vector.shape_cast %50 : vector<1x1x128xf32> to vector<1x128xf32>
    %52 = vector.shape_cast %49 : vector<1x128xf32> to vector<1x1x128xf32>
    tpu.vector_store %arg3[%c0_17, %c0_18, %c0_19], %52 {strides = array<i32>} : memref<1x1x128xf32, #tpu.memory_space<vmem>>, vector<1x1x128xf32>,
    return
  }
  func.func @transform_0(%arg0: i32) -> (i32, i32, i32) {
    %c0_i32 = arith.constant 0 : i32
    %c0_i32_0 = arith.constant 0 : i32
    %c0_i32_1 = arith.constant 0 : i32
    return %arg0, %c0_i32, %c0_i32_0 : i32, i32, i32
  }
  func.func @transform_1(%arg0: i32) -> (i32, i32, i32) {
    %c0_i32 = arith.constant 0 : i32
    %c0_i32_0 = arith.constant 0 : i32
    %c0_i32_1 = arith.constant 0 : i32
    return %arg0, %c0_i32, %c0_i32_0 : i32, i32, i32
  }
  func.func @transform_2(%arg0: i32) -> (i32, i32, i32) {
    %c0_i32 = arith.constant 0 : i32
    %c0_i32_0 = arith.constant 0 : i32
    %c0_i32_1 = arith.constant 0 : i32
    return %arg0, %c0_i32, %c0_i32_0 : i32, i32, i32
  }
}

</mosaic_0001>

<bundles_post_ra>
// kernel: tpu_custom_call.1
= control target key start
LH: loop header
LB: loop body
LE: loop exit
PB: predicated region body
PF: predicated region fallthrough
CT: control target
= control target key end

     0   :  { %7 = vsyncpa [#allocation3], 0  ;;  %s378_s0 = inlined_call_operand.hbm [shape: f32[1,8,32], index: 0, kind: input, shape index: {}]   ;;  %s379_s1 = inlined_call_operand.hbm [shape: f32[1,32,128], index: 1, kind: input, shape index: {}]   ;;  %s380_s2 = inlined_call_operand.hbm [shape: f32[1,1,128], index: 2, kind: output, shape index: {}]  }
   0x1   :  { %8 = vsyncpa [#allocation6], 0 }
   0x2   :  { %9 = vsyncpa [#allocation4], 0  ;;  %s313_s9 = smov [#allocation2]   ;;  %s314_s11 = smov [#allocation5]  }
   0x3   :  { %s16_s10 = sshll.u32 %s313_s9, 4  ;;  %s25_s12 = sshll.u32 %s314_s11, 4  ;;  %s17_s10 = int_to_ptr.vmem [resolvable:$true] %s16_s10  ;;  %s335_s12 = int_to_ptr.vmem [resolvable:$true] %s25_s12 }
   0x4   :  { %s241_s15 = scalar_lea.hbm %s378_s0, 128 }
   0x5   :  { %p242_p0 = scmp.ne.s32.totalorder %s378_s0, %s241_s15  ;;  %p245_p1 = scmp.lt.u32.totalorder %s241_s15, %s378_s0 }
   0x7   :  { %p247_p2 = pnand %p245_p1, %p242_p0 }
   0x9   :  { %250 = shalt.err (!%p247_p2)
}
   0xa   :  { %s251_s20 = scalar_lea.vmem %s17_s10, 128  ;;  %p256_p4 = scmp.lt.s32.totalorder %s17_s10, %s17_s10 }
   0xb   :  { %p252_p3 = scmp.ne.s32.totalorder %s17_s10, %s251_s20  ;;  %p257_p5 = scmp.lt.s32.totalorder %s251_s20, %s251_s20 }
   0xd   :  { %p258_p6 = por %p257_p5, %p256_p4 }
   0xf   :  { %p259_p7 = pnand %p258_p6, %p252_p3 }
  0x11   :  { %262 = shalt.err (!%p259_p7)
}
  0x12   :  { %19 = dma.hbm_to_vmem [thread:$0]  %s378_s0, 128, %s17_s10, [#allocation3]  }
  0x13   :  { %s263_s25 = scalar_lea.hbm %s379_s1, 512 }
  0x14   :  { %p264_p8 = scmp.ne.s32.totalorder %s379_s1, %s263_s25  ;;  %p267_p9 = scmp.lt.u32.totalorder %s263_s25, %s379_s1 }
  0x16   :  { %p269_p10 = pnand %p267_p9, %p264_p8 }
  0x18   :  { %272 = shalt.err (!%p269_p10)
}
  0x19   :  { %s273_s30 = scalar_lea.vmem %s335_s12, 512  ;;  %p278_p12 = scmp.lt.s32.totalorder %s335_s12, %s335_s12 }
  0x1a   :  { %p274_p11 = scmp.ne.s32.totalorder %s335_s12, %s273_s30  ;;  %p279_p13 = scmp.lt.s32.totalorder %s273_s30, %s273_s30 }
  0x1c   :  { %p280_p0 = por %p279_p13, %p278_p12 }
  0x1e   :  { %p281_p1 = pnand %p280_p0, %p274_p11 }
  0x20   :  { %284 = shalt.err (!%p281_p1)
}
  0x21   :  { %s315_s0 = smov 128   ;;  %s316_s3 = smov 8  }
  0x22   :  { %31 = dma.hbm_to_vmem [thread:$0]  %s379_s1, 512, %s335_s12, [#allocation6], %s315_s0, %s315_s0, %s316_s3  }
  0x23   :  { %307 = dma.done.wait [#allocation3], 128  }
  0x24   :  { %308 = vsyncadd [#allocation3], 4294967168 }
  0x25   :  { %309 = dma.done.wait [#allocation6], 512  }
  0x26   :  { %310 = vsyncadd [#allocation6], 4294966784  ;;  %v317_v0 = vmov 0.0   ;;  %vm318_vm0 = vmmov 0   ;;  %v40_v1 = vld [vmem:[#allocation5] sm:$0xff]  ;;  %v41_v2 = vld [vmem:[#allocation5 + $0x8] sm:$0xff] }
  0x27   :  { %208 = vmatprep.subr.bf16.mxu0 %v317_v0  ;;  %212 = vmatprep.mubr.msk.bf16.mxu0 %vm318_vm0, %v317_v0  ;;  %v42_v3 = vld [vmem:[#allocation5 + $0x10] sm:$0xff]  ;;  %v45_v4 = vpack.c.bf16 %v41_v2, %v40_v1  ;;  %v43_v5 = vld [vmem:[#allocation5 + $0x18] sm:$0xff]  ;;  %vm47_vm1 = vcmask 261120   ;;  %vm163_vm2 = vcmask 64512   ;;  %s319_s1 = smov [#allocation7]  }
  0x28   :  { %216 = vmatprep.subr.bf16.mxu1 %v317_v0  ;;  %218 = vmatprep.mubr.msk.bf16.mxu1 %vm318_vm0, %v317_v0  ;;  %v46_v6 = vpack.c.bf16 %v43_v5, %v42_v3  ;;  %v39_v7 = vld [vmem:[#allocation2] sm:$0xff]  ;;  %s192_s6 = sshll.u32 %s319_s1, 4  ;;  %s193_s6 = int_to_ptr.vmem [resolvable:$true] %s192_s6 }
  0x29   :  { %209 = vmatpush3.bf16.msra.mxu0 %v45_v4  ;;  %v44_v8 = vpack.c.bf16 %v39_v7, %v39_v7  ;;  %s285_s7 = scalar_lea.vmem %s193_s6, 16  ;;  %s289_s8 = scalar_lea.vmem %s193_s6, 32 }
  0x2a   :  { %210 = vmatprep.subr.bf16.mxu0 %v317_v0  ;;  %p286_p2 = scmp.ne.s32.totalorder %s193_s6, %s285_s7  ;;  %p290_p3 = scmp.lt.s32.totalorder %s193_s6, %s193_s6 }
  0x2b   :  { %p291_p4 = scmp.lt.s32.totalorder %s289_s8, %s285_s7 }
  0x2d   :  { %211 = vmatpush3.bf16.msra.mxu0 %v46_v6  ;;  %p292_p5 = por %p291_p4, %p290_p3 }
  0x2f   :  { %p293_p6 = pnand %p292_p5, %p286_p2 }
  0x30   :  { %213 = vmatmul.mubr.msk.bf16.vlgmr.msra.gmra.mrb[0].mxu0 %vm47_vm1, %v44_v8 }
 0x103   :  { %v85_v9 = vpop.f32.mrb[0].mxu0 }
 0x104   :  { %v91_v10 = vmul.f32 10.0, %v85_v9  ;;  %v214_v11 = vpop.f32.mrb[1].mxu0 }
 0x105   :  { %v88_v12 = vpop.f32.mrb[2].mxu0 }
 0x106   :  { %v101_v13 = vrot.slane %v91_v10, 4  ;;  %92 = vmax.xlane.f32.xlu0 %v91_v10  ;;  %v215_v14 = vpop.f32.mrb[3].mxu0 }
 0x108   :  { %v102_v15 = vmax.f32 %v91_v10, %v101_v13 }
 0x10a   :  { %v103_v16 = vrot.slane %v102_v15, 2 }
 0x10c   :  { %v104_v17 = vmax.f32 %v102_v15, %v103_v16 }
 0x10e   :  { %v105_v18 = vrot.slane %v104_v17, 1 }
 0x110   :  { %v106_v19 = vmax.f32 %v104_v17, %v105_v18 }
 0x112   :  { %v107_v20 = vsub.f32 %v91_v10, %v106_v19 }
 0x114   :  { %v108_v21 = vmul.f32 1.442695, %v107_v20 }
 0x116   :  { %229 = vpow2.f32 %v108_v21 }
 0x120   :  { %v230_v22 = vpop.eup %229 }
 0x121   :  { %v110_v23 = vrot.slane %v230_v22, 4 }
 0x123   :  { %v111_v24 = vadd.f32 %v230_v22, %v110_v23 }
 0x125   :  { %v112_v25 = vrot.slane %v111_v24, 2 }
 0x127   :  { %v113_v26 = vadd.f32 %v112_v25, %v111_v24 }
 0x129   :  { %v114_v27 = vrot.slane %v113_v26, 1 }
 0x12b   :  { %v115_v28 = vadd.f32 %v114_v27, %v113_v26 }
 0x12d   :  { %231 = vrcp.f32 %v115_v28 }
 0x137   :  { %v232_v29 = vpop.eup %231 }
 0x138   :  { %v117_v30 = vmul.f32 %v232_v29, %v230_v22 }
 0x13a   :  { %v122_v31 = vpack.c.bf16 %v117_v30, %v117_v30 }
 0x13c   :  { %217 = vmatpush3.bf16.xpose.msra.mxu1 %v122_v31 }
 0x193   :  { %v93_v32 = vpop.xlane.xlu0 %92 }
 0x194   :  { %v94_v33 = vsub.f32 %v91_v10, %v93_v32 }
 0x196   :  { %v95_v34 = vmul.f32 1.442695, %v94_v33 }
 0x198   :  { %233 = vpow2.f32 %v95_v34 }
 0x1a2   :  { %v234_v35 = vpop.eup %233 }
 0x1a3   :  { %97 = vadd.xlane.f32.xlu0 %v234_v35 }
 0x230   :  { %v98_v36 = vpop.xlane.xlu0 %97 }
 0x231   :  { %235 = vrcp.f32 %v98_v36 }
 0x23b   :  { %v236_v37 = vpop.eup %235 }
 0x23c   :  { %v100_v38 = vmul.f32 %v236_v37, %v234_v35 }
 0x23e   :  { %v121_v39 = vpack.c.bf16 %v100_v38, %v100_v38  ;;  %v118_v40 = vmul.f32 %v117_v30, %v100_v38 }
 0x240   :  { %219 = vmatmul.mubr.bf16.vlgmr.msra.gmra.mrb[0].mxu1 %v121_v39  ;;  %119 = vadd.xlane.f32.xlu0 %v118_v40 }
 0x2cd   :  { %v120_v55 = vpop.xlane.xlu0 %119 }
 0x313   :  { %v157_v41 = vpop.f32.mrb[0].mxu1 }
 0x314   :  { %v220_v42 = vpop.f32.mrb[1].mxu1  ;;  %v164_v43 = vsel %vm163_vm2, %v157_v41, -inf }
 0x315   :  { %165 = vmax.xlane.f32.xlu1 %v164_v43  ;;  %v160_v44 = vpop.f32.mrb[2].mxu1 }
 0x316   :  { %v221_v45 = vpop.f32.mrb[3].mxu1 }
 0x3a2   :  { %v166_v46 = vpop.xlane.xlu1 %165 }
 0x3a3   :  { %v167_v47 = vsub.f32 %v157_v41, %v166_v46 }
 0x3a5   :  { %v168_v48 = vmul.f32 1.442695, %v167_v47 }
 0x3a7   :  { %237 = vpow2.f32 %v168_v48 }
 0x3b1   :  { %v238_v49 = vpop.eup %237 }
 0x3b2   :  { %v170_v50 = vsel %vm163_vm2, %v238_v49, 0.0 }
 0x3b3   :  { %171 = vadd.xlane.f32.xlu1 %v170_v50 }
 0x440   :  { %v172_v51 = vpop.xlane.xlu1 %171 }
 0x441   :  { %239 = vlog2.f32 %v172_v51 }
 0x44b   :  { %v240_v52 = vpop.eup %239 }
 0x44c   :  { %v174_v53 = vmul.f32 0.6931472, %v240_v52 }
 0x44e   :  { %v175_v54 = vadd.f32 %v174_v53, %v166_v46 }
 0x450   :  { %v176_v56 = vsub.f32 %v175_v54, %v120_v55 }
 0x452   :  { %v177_v57 = vmin.f32 %v176_v56, 18.420681 }
 0x454   :  { %v178_v58 = vrot.slane %v177_v57, 4 }
 0x456   :  { %v179_v59 = vadd.f32 %v178_v58, %v177_v57 }
 0x458   :  { %v180_v60 = vrot.slane %v179_v59, 2 }
 0x45a   :  { %v181_v61 = vadd.f32 %v180_v60, %v179_v59 }
 0x45c   :  { %v182_v62 = vrot.slane %v181_v61, 1 }
 0x45e   :  { %v183_v63 = vadd.f32 %v182_v62, %v181_v61 }
 0x460   :  { %v184_v0 = vmul.f32 0.125, %v183_v63 }
 0x462   :  { %185 = vst [vmem:[#allocation7] sm:$0x1] %v184_v0 }
 0x463   :  { %296 = shalt.err (!%p293_p6)
}
 0x464   :  { %s297_s11 = scalar_lea.hbm %s380_s2, 16 }
 0x465   :  { %p298_p7 = scmp.ne.s32.totalorder %s380_s2, %s297_s11  ;;  %p301_p8 = scmp.lt.u32.totalorder %s297_s11, %s380_s2 }
 0x467   :  { %p303_p9 = pnand %p301_p8, %p298_p7 }
 0x469   :  { %306 = shalt.err (!%p303_p9)
}
 0x46a   :  { %195 = dma.vmem_to_hbm [thread:$0]  %s193_s6, 16, %s380_s2, [#allocation4]  }
 0x46b   :  { %311 = dma.done.wait [#allocation4], 16  }
 0x46c   :  { %312 = vsyncadd [#allocation4], 4294967280 }
 0x46d   :  { %199 = vsyncpa [#allocation3], 1 }
 0x46e   :  { %200 = vsyncpa [#allocation6], 1 }
 0x46f   :  { %201 = vsyncpa [#allocation4], 1 }

</bundles_post_ra>
